<compile_context>
chip_gen: v6e
topology: v6e:2x2x1
jax: 0.10.0
libtpu: 0.0.40
codegen_flags: <defaults>
</compile_context>

<pallas_src>
import math

import jax
import jax.numpy as jnp
from jax.experimental import pallas as pl
from jax.experimental.pallas import tpu as pltpu


def lstm_cell_kernel(xh_ref, c0_ref, w_ref, b_ref, hc_ref):
    """One LSTM-cell step on a batch tile: 1 fused MXU matmul + VPU/EUP gates.

    xh_ref : (bb, I+H)  compute dtype (f32 or bf16)  -- [x | h0]
    c0_ref : (bb, H)    f32
    w_ref  : (I+H, 4H)  compute dtype                -- [W_ih^T ; W_hh^T]
    b_ref  : (1, 4H)    f32                          -- b_ih + b_hh
    hc_ref : (bb, 2H)   output dtype                 -- [h | c]
    """
    # Single fused MXU matmul with f32 accumulation; bias is the accumulator init.
    gates = b_ref[...] + jnp.dot(
        xh_ref[...], w_ref[...], preferred_element_type=jnp.float32)

    H = c0_ref.shape[-1]
    # chunk(4, dim=1) ordering: ingate, forgetgate, cellgate, outgate.
    # NOTE: when H % 128 != 0 a gate-major (bb, 4, H) layout keeps every gate
    # full-lane-width; kept (bb, 4H) here since the slices are static and the
    # scaling target (H a multiple of 128) is lane-aligned in this layout.
    ingate = jax.nn.sigmoid(gates[:, 0 * H:1 * H])
    forgetgate = jax.nn.sigmoid(gates[:, 1 * H:2 * H])
    cellgate = jnp.tanh(gates[:, 2 * H:3 * H])
    outgate = jax.nn.sigmoid(gates[:, 3 * H:4 * H])

    c_new = forgetgate * c0_ref[...] + ingate * cellgate   # f32 state math
    h_new = outgate * jnp.tanh(c_new)

    # Single lane-dense store of the [h | c] slab.
    hc_ref[...] = jnp.concatenate([h_new, c_new], axis=-1).astype(hc_ref.dtype)


def prepare_lstm_params(params, compute_dtype=jnp.float32):
    """One-time (param-load-time) prep: transpose + fuse weights, fuse biases.

    Done once, not per forward call, so no per-step weight-transpose HBM traffic.
    """
    w_ih, w_hh, b_ih, b_hh = params            # (4H, I), (4H, H), (4H,), (4H,)
    H = w_hh.shape[1]
    w_fused = jnp.concatenate(
        [jnp.transpose(w_ih), jnp.transpose(w_hh)], axis=0).astype(compute_dtype)
    b_fused = (b_ih + b_hh).astype(jnp.float32).reshape(1, 4 * H)
    return w_fused, b_fused                     # (I+H, 4H), (1, 4H)


def lstm_forward(x, hx, cx, prepared_params, *, block_b=None,
                 vmem_limit_bytes=64 * 1024 * 1024):
    """Mirrors LSTM.forward for num_layers=1. Returns ([h], [c])."""
    w_fused, b_fused = prepared_params
    B, _ = x.shape
    K, G = w_fused.shape
    H = G // 4
    compute_dtype = w_fused.dtype

    h0 = hx[0]
    c0 = cx[0].astype(jnp.float32)
    # Fused matmul operand [x | h0]; only the MXU operands get the compute dtype.
    xh = jnp.concatenate([x, h0], axis=-1).astype(compute_dtype)   # (B, I+H)

    if block_b is None:
        block_b = B if B <= 256 else 256
    grid = (pl.cdiv(B, block_b),)

    hc = pl.pallas_call(
        lstm_cell_kernel,
        out_shape=jax.ShapeDtypeStruct((B, 2 * H), x.dtype),
        grid_spec=pltpu.PrefetchScalarGridSpec(
            num_scalar_prefetch=0,
            grid=grid,
            in_specs=[
                pl.BlockSpec((block_b, K), lambda i: (i, 0)),  # [x|h0]: batch-tiled
                pl.BlockSpec((block_b, H), lambda i: (i, 0)),  # c0: batch-tiled
                pl.BlockSpec((K, G), lambda i: (0, 0)),        # weights: resident
                pl.BlockSpec((1, G), lambda i: (0, 0)),        # bias: resident
            ],
            out_specs=pl.BlockSpec((block_b, 2 * H), lambda i: (i, 0)),
        ),
        compiler_params=pltpu.CompilerParams(
            dimension_semantics=("parallel",),   # megacore / v7x dual-TC sharding
            vmem_limit_bytes=vmem_limit_bytes,
        ),
    )(xh, c0, w_fused, b_fused)

    h_new = hc[:, :H]
    c_new = hc[:, H:]
    return [h_new], [c_new]


def lstm_forward_ref(x, hx, cx, params):
    """Pure-JAX reference of the PyTorch forward (num_layers=1)."""
    w_ih, w_hh, b_ih, b_hh = params
    H = w_hh.shape[1]
    gates = x @ w_ih.T + b_ih + hx[0] @ w_hh.T + b_hh
    i = jax.nn.sigmoid(gates[:, 0 * H:1 * H])
    f = jax.nn.sigmoid(gates[:, 1 * H:2 * H])
    g = jnp.tanh(gates[:, 2 * H:3 * H])
    o = jax.nn.sigmoid(gates[:, 3 * H:4 * H])
    c = f * cx[0] + i * g
    h = o * jnp.tanh(c)
    return [h], [c]


if __name__ == "__main__":
    # Small shapes consistent with the module.
    batch = 8
    input_size = 16
    hidden_size = 32
    num_layers = 1

    key = jax.random.PRNGKey(0)
    k_x, k_h, k_c, k_wih, k_whh, k_bih, k_bhh = jax.random.split(key, 7)

    # Deterministic parameter init, matching reset_parameters():
    # uniform(-stdv, stdv) with stdv = 1/sqrt(hidden_size).
    stdv = 1.0 / math.sqrt(hidden_size)
    gate_size = 4 * hidden_size
    w_ih = jax.random.uniform(k_wih, (gate_size, input_size), jnp.float32, -stdv, stdv)
    w_hh = jax.random.uniform(k_whh, (gate_size, hidden_size), jnp.float32, -stdv, stdv)
    b_ih = jax.random.uniform(k_bih, (gate_size,), jnp.float32, -stdv, stdv)
    b_hh = jax.random.uniform(k_bhh, (gate_size,), jnp.float32, -stdv, stdv)
    params = (w_ih, w_hh, b_ih, b_hh)

    x = jax.random.normal(k_x, (batch, input_size), jnp.float32)
    hx = jax.random.normal(k_h, (num_layers, batch, hidden_size), jnp.float32)
    cx = jax.random.normal(k_c, (num_layers, batch, hidden_size), jnp.float32)

    ref_hx, ref_cx = lstm_forward_ref(x, hx, cx, params)

    # --- f32 path (tight numerics check) ---
    prepared_f32 = prepare_lstm_params(params, compute_dtype=jnp.float32)
    all_hx, all_cx = lstm_forward(x, hx, cx, prepared_f32)
    jax.block_until_ready((all_hx, all_cx))
    assert jnp.allclose(all_hx[0], ref_hx[0], atol=3e-5, rtol=3e-5)
    assert jnp.allclose(all_cx[0], ref_cx[0], atol=3e-5, rtol=3e-5)

    # --- bf16 MXU-operand path (f32 accumulation / f32 state math) ---
    prepared_bf16 = prepare_lstm_params(params, compute_dtype=jnp.bfloat16)
    bf_hx, bf_cx = lstm_forward(x, hx, cx, prepared_bf16)
    jax.block_until_ready((bf_hx, bf_cx))
    assert jnp.allclose(bf_hx[0], ref_hx[0], atol=5e-2, rtol=5e-2)
    assert jnp.allclose(bf_cx[0], ref_cx[0], atol=5e-2, rtol=5e-2)

    print("KERNEL_OK")
</pallas_src>

<mosaic_0001>
module attributes {stable_mosaic.version = 11 : i64} {
  func.func @lstm_cell_kernel(%arg0: i32, %arg1: memref<8x48xf32, #tpu.memory_space<vmem>>, %arg2: memref<8x32xf32, #tpu.memory_space<vmem>>, %arg3: memref<48x128xf32, #tpu.memory_space<vmem>>, %arg4: memref<1x128xf32, #tpu.memory_space<vmem>>, %arg5: memref<8x64xf32, #tpu.memory_space<vmem>>) attributes {dimension_semantics = [#tpu.dimension_semantics<parallel>], iteration_bounds = array<i64: 1>, scalar_prefetch = 0 : i64, scratch_operands = 0 : i64, tpu.core_type = #tpu.core_type<tc>, window_params = [{transform_indices = @transform_0, window_bounds = array<i64: 8, 48>}, {transform_indices = @transform_1, window_bounds = array<i64: 8, 32>}, {pipeline_mode = #tpu.pipeline_mode<synchronous>, transform_indices = @transform_2, window_bounds = array<i64: 48, 128>}, {pipeline_mode = #tpu.pipeline_mode<synchronous>, transform_indices = @transform_3, window_bounds = array<i64: 1, 128>}, {transform_indices = @transform_4, window_bounds = array<i64: 8, 64>}]} {
    %c0 = arith.constant 0 : index
    %c0_0 = arith.constant 0 : index
    %0 = vector.load %arg4[%c0, %c0_0] : memref<1x128xf32, #tpu.memory_space<vmem>>, vector<1x128xf32>
    %c0_1 = arith.constant 0 : index
    %c0_2 = arith.constant 0 : index
    %1 = vector.load %arg1[%c0_1, %c0_2] : memref<8x48xf32, #tpu.memory_space<vmem>>, vector<8x48xf32>
    %c0_3 = arith.constant 0 : index
    %c0_4 = arith.constant 0 : index
    %2 = vector.load %arg3[%c0_3, %c0_4] : memref<48x128xf32, #tpu.memory_space<vmem>>, vector<48x128xf32>
    %cst = arith.constant dense<0.000000e+00> : vector<8x128xf32>
    %3 = tpu.matmul %1, %2, %cst {dimension_numbers = #tpu.dot_dimension_numbers<[1], [0], [0], [1], [0, 0, 1, 1], [], []>} : vector<8x48xf32>, vector<48x128xf32>, vector<8x128xf32> -> vector<8x128xf32>
    %4 = vector.broadcast %0 : vector<1x128xf32> to vector<8x128xf32>
    %5 = arith.addf %4, %3 : vector<8x128xf32>
    %6 = vector.extract_strided_slice %5 {offsets = [0, 0], sizes = [8, 32], strides = [1, 1]} : vector<8x128xf32> to vector<8x32xf32>
    %7 = arith.negf %6 : vector<8x32xf32>
    %8 = math.exp %7 : vector<8x32xf32>
    %cst_5 = arith.constant 1.000000e+00 : f32
    %9 = vector.broadcast %cst_5 : f32 to vector<8x32xf32>
    %10 = arith.addf %9, %8 : vector<8x32xf32>
    %11 = arith.divf %9, %10 : vector<8x32xf32>
    %12 = vector.extract_strided_slice %5 {offsets = [0, 32], sizes = [8, 32], strides = [1, 1]} : vector<8x128xf32> to vector<8x32xf32>
    %13 = arith.negf %12 : vector<8x32xf32>
    %14 = math.exp %13 : vector<8x32xf32>
    %cst_6 = arith.constant 1.000000e+00 : f32
    %15 = vector.broadcast %cst_6 : f32 to vector<8x32xf32>
    %16 = arith.addf %15, %14 : vector<8x32xf32>
    %17 = arith.divf %15, %16 : vector<8x32xf32>
    %18 = vector.extract_strided_slice %5 {offsets = [0, 64], sizes = [8, 32], strides = [1, 1]} : vector<8x128xf32> to vector<8x32xf32>
    %19 = math.tanh %18 : vector<8x32xf32>
    %20 = vector.extract_strided_slice %5 {offsets = [0, 96], sizes = [8, 32], strides = [1, 1]} : vector<8x128xf32> to vector<8x32xf32>
    %21 = arith.negf %20 : vector<8x32xf32>
    %22 = math.exp %21 : vector<8x32xf32>
    %cst_7 = arith.constant 1.000000e+00 : f32
    %23 = vector.broadcast %cst_7 : f32 to vector<8x32xf32>
    %24 = arith.addf %23, %22 : vector<8x32xf32>
    %25 = arith.divf %23, %24 : vector<8x32xf32>
    %c0_8 = arith.constant 0 : index
    %c0_9 = arith.constant 0 : index
    %26 = vector.load %arg2[%c0_8, %c0_9] : memref<8x32xf32, #tpu.memory_space<vmem>>, vector<8x32xf32>
    %27 = arith.mulf %17, %26 : vector<8x32xf32>
    %28 = arith.mulf %11, %19 : vector<8x32xf32>
    %29 = arith.addf %27, %28 : vector<8x32xf32>
    %30 = math.tanh %29 : vector<8x32xf32>
    %31 = arith.mulf %25, %30 : vector<8x32xf32>
    %32 = tpu.concatenate %31, %29 in 1 : vector<8x32xf32>, vector<8x32xf32> -> vector<8x64xf32>
    %c0_10 = arith.constant 0 : index
    %c0_11 = arith.constant 0 : index
    %33 = vector.load %arg5[%c0_10, %c0_11] : memref<8x64xf32, #tpu.memory_space<vmem>>, vector<8x64xf32>
    tpu.vector_store %arg5[%c0_10, %c0_11], %32 {strides = array<i32>} : memref<8x64xf32, #tpu.memory_space<vmem>>, vector<8x64xf32>,
    return
  }
  func.func @transform_0(%arg0: i32) -> (i32, i32) {
    %c0_i32 = arith.constant 0 : i32
    %c0_i32_0 = arith.constant 0 : i32
    return %arg0, %c0_i32 : i32, i32
  }
  func.func @transform_1(%arg0: i32) -> (i32, i32) {
    %c0_i32 = arith.constant 0 : i32
    %c0_i32_0 = arith.constant 0 : i32
    return %arg0, %c0_i32 : i32, i32
  }
  func.func @transform_2(%arg0: i32) -> (i32, i32) {
    %c0_i32 = arith.constant 0 : i32
    %c0_i32_0 = arith.constant 0 : i32
    %c0_i32_1 = arith.constant 0 : i32
    return %c0_i32, %c0_i32_0 : i32, i32
  }
  func.func @transform_3(%arg0: i32) -> (i32, i32) {
    %c0_i32 = arith.constant 0 : i32
    %c0_i32_0 = arith.constant 0 : i32
    %c0_i32_1 = arith.constant 0 : i32
    return %c0_i32, %c0_i32_0 : i32, i32
  }
  func.func @transform_4(%arg0: i32) -> (i32, i32) {
    %c0_i32 = arith.constant 0 : i32
    %c0_i32_0 = arith.constant 0 : i32
    return %arg0, %c0_i32 : i32, i32
  }
}

</mosaic_0001>

<bundles_post_ra>
// kernel: tpu_custom_call.1
= control target key start
LH: loop header
LB: loop body
LE: loop exit
PB: predicated region body
PF: predicated region fallthrough
CT: control target
= control target key end

     0   :  { %9 = vsyncpa [#allocation3], 0  ;;  %s376_s0 = inlined_call_operand.hbm [shape: f32[8,48], index: 0, kind: input, shape index: {}]   ;;  %s377_s1 = inlined_call_operand.hbm [shape: f32[8,32], index: 1, kind: input, shape index: {}]   ;;  %s378_s2 = inlined_call_operand.hbm [shape: f32[48,128], index: 2, kind: input, shape index: {}]   ;;  %s379_s3 = inlined_call_operand.vmem [shape: f32[1,128], index: 3, kind: input, shape index: {}]   ;;  %s380_s4 = inlined_call_operand.hbm [shape: f32[8,64], index: 4, kind: output, shape index: {}]  }
   0x1   :  { %10 = vsyncpa [#allocation6], 0 }
   0x2   :  { %11 = vsyncpa [#allocation4], 0  ;;  %s326_s15 = smov [#allocation5]   ;;  %s327_s17 = smov [#allocation2]  }
   0x3   :  { %s28_s16 = sshll.u32 %s326_s15, 4  ;;  %s18_s18 = sshll.u32 %s327_s17, 4  ;;  %s29_s16 = int_to_ptr.vmem [resolvable:$true] %s28_s16  ;;  %s19_s18 = int_to_ptr.vmem [resolvable:$true] %s18_s18 }
   0x4   :  { %s248_s19 = scalar_lea.vmem %s29_s16, 128  ;;  %p253_p1 = scmp.lt.s32.totalorder %s29_s16, %s29_s16 }
   0x5   :  { %p249_p0 = scmp.ne.s32.totalorder %s29_s16, %s248_s19  ;;  %p254_p2 = scmp.lt.s32.totalorder %s248_s19, %s248_s19 }
   0x7   :  { %p255_p3 = por %p254_p2, %p253_p1 }
   0x9   :  { %p256_p4 = pnand %p255_p3, %p249_p0 }
   0xb   :  { %259 = shalt.err (!%p256_p4)
}
   0xc   :  { %31 = dma.hbm_to_vmem [thread:$0]  %s377_s1, 128, %s29_s16, [#allocation6]  }
   0xd   :  { %s268_s22 = scalar_lea.vmem %s19_s18, 128  ;;  %p273_p6 = scmp.lt.s32.totalorder %s19_s18, %s19_s18 }
   0xe   :  { %p269_p5 = scmp.ne.s32.totalorder %s19_s18, %s268_s22  ;;  %p274_p7 = scmp.lt.s32.totalorder %s268_s22, %s268_s22 }
  0x10   :  { %p275_p8 = por %p274_p7, %p273_p6 }
  0x12   :  { %p276_p9 = pnand %p275_p8, %p269_p5 }
  0x14   :  { %279 = shalt.err (!%p276_p9)
}
  0x15   :  { %21 = dma.hbm_to_vmem [thread:$0]  %s376_s0, 128, %s19_s18, [#allocation3]  }
  0x16   :  { %s328_s25 = smov [#allocation7]  }
  0x17   :  { %s37_s26 = sshll.u32 %s328_s25, 4  ;;  %s38_s26 = int_to_ptr.vmem [resolvable:$true] %s37_s26 }
  0x18   :  { %s288_s27 = scalar_lea.vmem %s38_s26, 768  ;;  %p293_p11 = scmp.lt.s32.totalorder %s38_s26, %s38_s26 }
  0x19   :  { %p289_p10 = scmp.ne.s32.totalorder %s38_s26, %s288_s27  ;;  %p294_p12 = scmp.lt.s32.totalorder %s288_s27, %s288_s27 }
  0x1b   :  { %p295_p13 = por %p294_p12, %p293_p11 }
  0x1d   :  { %p296_p0 = pnand %p295_p13, %p289_p10 }
  0x1f   :  { %299 = shalt.err (!%p296_p0)
}
  0x20   :  { %s329_s1 = smov 128   ;;  %s330_s28 = smov 8  }
  0x21   :  { %43 = dma.hbm_to_vmem [thread:$0]  %s378_s2, 768, %s38_s26, [#allocation6], %s329_s1, %s329_s1, %s330_s28  }
  0x22   :  { %320 = dma.done.wait [#allocation3], 128  }
  0x23   :  { %321 = vsyncadd [#allocation3], 4294967168 }
  0x24   :  { %322 = dma.done.wait [#allocation6], 896  }
  0x25   :  { %323 = vsyncadd [#allocation6], 4294966400  ;;  %v331_v0 = vmov 0.0   ;;  %vm332_vm0 = vmmov 0   ;;  %v62_v1 = vld [vmem:[#allocation7 + $0x28] sm:$0xff]  ;;  %v61_v2 = vld [vmem:[#allocation7 + $0x20] sm:$0xff] }
  0x26   :  { %207 = vmatprep.subr.mxu0 %v331_v0  ;;  %219 = vmatprep.mubr.msk.f32.mxu0 %vm332_vm0, %v331_v0  ;;  %v60_v3 = vld [vmem:[#allocation7 + $0x18] sm:$0xff]  ;;  %v59_v4 = vld [vmem:[#allocation7 + $0x10] sm:$0xff]  ;;  %v58_v5 = vld [vmem:[#allocation7 + $0x8] sm:$0xff]  ;;  %vm63_vm1 = vcmask 392192   ;;  %s333_s5 = smov 64   ;;  %s334_s6 = smov 32  }
  0x27   :  { %208 = vmatpush3.msra.mxu0 %v62_v1  ;;  %v57_v6 = vld [vmem:[#allocation7] sm:$0xff]  ;;  %v56_v7 = vld [vmem:[#allocation2] sm:$0xff]  ;;  %v151_v13 = vld [vmem:[#allocation5] sm:$0xff]  ;;  %vm177_vm2 = vcmask 261120   ;;  %vm179_vm3 = vcmask 523264  }
  0x28   :  { %209 = vmatprep.subr.mxu0 %v331_v0  ;;  %v198_v8 = vld [vmem:[%s379_s3] ss:$0 sm:$0xff]  ;;  %s335_s3 = smov [#allocation8]  }
  0x29   :  { %210 = vmatpush3.msra.mxu0 %v61_v2  ;;  %s187_s7 = sshll.u32 %s335_s3, 4  ;;  %s188_s7 = int_to_ptr.vmem [resolvable:$true] %s187_s7 }
  0x2a   :  { %211 = vmatprep.subr.mxu0 %v331_v0  ;;  %s300_s8 = scalar_lea.vmem %s188_s7, 128  ;;  %p305_p2 = scmp.lt.s32.totalorder %s188_s7, %s188_s7 }
  0x2b   :  { %212 = vmatpush3.msra.mxu0 %v60_v3  ;;  %p301_p1 = scmp.ne.s32.totalorder %s188_s7, %s300_s8  ;;  %p306_p3 = scmp.lt.s32.totalorder %s300_s8, %s300_s8 }
  0x2c   :  { %213 = vmatprep.subr.mxu0 %v331_v0 }
  0x2d   :  { %214 = vmatpush3.msra.mxu0 %v59_v4  ;;  %p307_p4 = por %p306_p3, %p305_p2 }
  0x2e   :  { %215 = vmatprep.subr.mxu0 %v331_v0 }
  0x2f   :  { %216 = vmatpush3.msra.mxu0 %v58_v5  ;;  %p308_p5 = pnand %p307_p4, %p301_p1 }
  0x30   :  { %217 = vmatprep.subr.mxu0 %v331_v0 }
  0x31   :  { %218 = vmatpush3.msra.mxu0 %v57_v6 }
  0x32   :  { %220 = vmatmul.mubr.msk.f32.vlgmr.msra.gmra.mxu0 %vm63_vm1, %v56_v7 }
  0xf2   :  { %v133_v9 = vpop.f32.mrf.mxu0 }
  0xf3   :  { %v143_v10 = vadd.f32 %v198_v8, %v133_v9 }
  0xf4   :  { %v221_v11 = vpop.f32.mrf.mxu0 }
  0xf5   :  { %232 = vtanh.f32 %v143_v10  ;;  %v199_v14 = vmul.f32 -1.442695, %v143_v10 }
  0xf7   :  { %234 = vpow2.f32 %v199_v14 }
 0x102   :  { %v233_v12 = vpop.eup %232 }
 0x103   :  { %158 = vrot.lane.b32.xlu0 %v233_v12, %s333_s5 }
 0x104   :  { %v235_v15 = vpop.eup %234 }
 0x105   :  { %v147_v16 = vadd.f32 1.0, %v235_v15 }
 0x107   :  { %153 = vrot.lane.b32.xlu0 %v151_v13, %s334_s6  ;;  %236 = vrcp.f32 %v147_v16 }
 0x114   :  { %v237_v17 = vpop.eup %236 }
 0x175   :  { %v159_v18 = vpop.permute.xlu0 %158 }
 0x176   :  { %v161_v19 = vmul.f32 %v237_v17, %v159_v18 }
 0x178   :  { %163 = vrot.lane.b32.xlu1 %v161_v19, %s334_s6 }
 0x179   :  { %v154_v20 = vpop.permute.xlu0 %153 }
 0x17a   :  { %v156_v21 = vmul.f32 %v237_v17, %v154_v20 }
 0x1ea   :  { %v164_v22 = vpop.permute.xlu1 %163 }
 0x1eb   :  { %v166_v23 = vadd.f32 %v164_v22, %v156_v21 }
 0x1ed   :  { %238 = vtanh.f32 %v166_v23 }
 0x1fa   :  { %v239_v24 = vpop.eup %238 }
 0x1fb   :  { %169 = vrot.lane.b32.xlu1 %v239_v24, %s333_s5 }
 0x26d   :  { %v170_v25 = vpop.permute.xlu1 %169 }
 0x26e   :  { %v172_v26 = vmul.f32 %v237_v17, %v170_v25 }
 0x270   :  { %174 = vrot.lane.b32.xlu0 %v172_v26, %s334_s6 }
 0x2e2   :  { %v175_v27 = vpop.permute.xlu0 %174 }
 0x2e3   :  { %v178_v28 = vsel %vm177_vm2, %v175_v27, %v166_v23 }
 0x2e4   :  { %180 = vst.msk [vmem:[#allocation8] sm:$0xff] %vm179_vm3, %v178_v28 }
 0x2e5   :  { %311 = shalt.err (!%p308_p5)
}
 0x2e6   :  { %190 = dma.vmem_to_hbm [thread:$0]  %s188_s7, 128, %s380_s4, [#allocation4]  }
 0x2e7   :  { %324 = dma.done.wait [#allocation4], 128  }
 0x2e8   :  { %325 = vsyncadd [#allocation4], 4294967168 }
 0x2e9   :  { %194 = vsyncpa [#allocation3], 1 }
 0x2ea   :  { %195 = vsyncpa [#allocation6], 1 }
 0x2eb   :  { %196 = vsyncpa [#allocation4], 1 }

</bundles_post_ra>
